<compile_context>
chip_gen: v7x
topology: tpu7x:2x2x1
jax: 0.10.0
libtpu: 0.0.40
codegen_flags: <defaults>
</compile_context>

<pallas_src>
import jax
import jax.numpy as jnp
from jax.experimental import pallas as pl
from jax.experimental.pallas import tpu as pltpu

_LANE = 128
_SUBLANE = 8
# Only split a single-tile batch across the two v7x cores when each core
# still gets at least this many rows of real work.
_MIN_ROWS_PER_CORE = 256


def _cdiv(a, b):
    return (a + b - 1) // b


def _round_up(x, m):
    return ((x + m - 1) // m) * m


def evidence_classifier_kernel(x_ref, w_ref, b_ref, o_ref):
    # x_ref: (bm, D), w_ref: (D, Cp), b_ref: (1, Cp), o_ref: (bm, Cp)
    z = jnp.dot(x_ref[...], w_ref[...], preferred_element_type=jnp.float32)
    z = z + b_ref[...]
    # Softplus matching torch.nn.Softplus (beta=1, threshold=20):
    #   out = x                 if x > 20
    #   out = log(1 + exp(x))   otherwise
    z_safe = jnp.minimum(z, 20.0)          # keep the false branch finite
    sp = jnp.where(z > 20.0, z, jnp.log1p(jnp.exp(z_safe)))
    o_ref[...] = sp.astype(o_ref.dtype)


def evidence_classifier_forward(x, w_t, b, *, block_batch=1024,
                                compute_dtype=None):
    """x: (B, D), w_t: (D, C), b: (C,) -> (B, C) float32."""
    B, D = x.shape
    C = w_t.shape[1]
    out_dtype = jnp.float32

    # ---- lane-dense class dimension (pad C -> multiple of 128) -----------
    C_pad = _round_up(C, _LANE)
    w_p = w_t if C_pad == C else jnp.pad(w_t, ((0, 0), (0, C_pad - C)))
    b_p = (b if C_pad == C else jnp.pad(b, (0, C_pad - C))).reshape(1, C_pad)

    # ---- batch tiling: balanced row tiles (<= block_batch rows each) -----
    n_tiles = max(1, _cdiv(B, block_batch))
    if n_tiles == 1 and B >= 2 * _MIN_ROWS_PER_CORE:
        # Large single-tile batch: split in two so the parallel grid axis can
        # be sharded across both TensorCores on v7x.
        n_tiles = 2
    bm = max(_SUBLANE, _round_up(_cdiv(B, n_tiles), _SUBLANE))
    B_pad = _round_up(B, bm)
    grid = B_pad // bm

    # Only pads when needed; padding is < bm rows (and < 8 rows for the
    # balanced-tile path), so the extra HBM copy is negligible.
    x_p = x if B_pad == B else jnp.pad(x, ((0, B_pad - B), (0, 0)))

    # Optional bf16 activations/weights (mem-bound kernel: halves x traffic);
    # the MXU accumulator and the softplus stay in float32.
    if compute_dtype is not None:
        x_p = x_p.astype(compute_dtype)
        w_p = w_p.astype(compute_dtype)

    itemsize = jnp.dtype(x_p.dtype).itemsize
    cost = pl.CostEstimate(
        flops=2 * B_pad * D * C_pad,
        transcendentals=2 * B_pad * C_pad,            # exp + log1p per element
        bytes_accessed=(B_pad * D + D * C_pad) * itemsize
                       + C_pad * 4 + B_pad * C_pad * 4,
    )

    out = pl.pallas_call(
        evidence_classifier_kernel,
        out_shape=jax.ShapeDtypeStruct((B_pad, C_pad), out_dtype),
        grid_spec=pltpu.PrefetchScalarGridSpec(
            num_scalar_prefetch=0,
            grid=(grid,),
            in_specs=[
                pl.BlockSpec((bm, D), lambda i: (i, 0)),
                pl.BlockSpec((D, C_pad), lambda i: (0, 0)),   # grid-invariant
                pl.BlockSpec((1, C_pad), lambda i: (0, 0)),   # grid-invariant
            ],
            out_specs=pl.BlockSpec((bm, C_pad), lambda i: (i, 0)),
        ),
        compiler_params=pltpu.CompilerParams(
            dimension_semantics=("parallel",),
        ),
        cost_estimate=cost,
    )(x_p, w_p, b_p)

    return out[:B, :C]


def init_params(key, bottleneck_dim, class_num):
    """Deterministic xavier_normal_ weight (PyTorch shape (class_num, bottleneck_dim)),
    zero bias — matching init_weights() for 'Linear'."""
    std = (2.0 / (bottleneck_dim + class_num)) ** 0.5
    w = jax.random.normal(key, (class_num, bottleneck_dim), dtype=jnp.float32) * std
    b = jnp.zeros((class_num,), dtype=jnp.float32)
    # pre-transpose for the kernel: (D, C)
    return w.T, b


if __name__ == "__main__":
    class_num = 10
    bottleneck_dim = 256

    key = jax.random.PRNGKey(0)
    k_x1, k_x2, k_x3, k_w = jax.random.split(key, 4)

    w_t, b = init_params(k_w, bottleneck_dim, class_num)

    def ref_fn(xx):
        z = xx @ w_t + b[None, :]
        return jnp.where(z > 20.0, z, jnp.log1p(jnp.exp(jnp.minimum(z, 20.0))))

    # Case 1: tiny batch (single grid step, no padding needed).
    x1 = jax.random.normal(k_x1, (8, bottleneck_dim), dtype=jnp.float32)
    out1 = jax.block_until_ready(evidence_classifier_forward(x1, w_t, b))
    assert out1.shape == (8, class_num)
    assert jnp.allclose(out1, ref_fn(x1), atol=2e-5, rtol=2e-5)

    # Case 2: non-divisible batch -> exercises row padding (single tile).
    x2 = jax.random.normal(k_x2, (37, bottleneck_dim), dtype=jnp.float32)
    out2 = jax.block_until_ready(evidence_classifier_forward(x2, w_t, b))
    assert out2.shape == (37, class_num)
    assert jnp.allclose(out2, ref_fn(x2), atol=2e-5, rtol=2e-5)

    # Case 3: larger batch -> balanced 2-tile grid (megacore-shardable axis).
    x3 = jax.random.normal(k_x3, (515, bottleneck_dim), dtype=jnp.float32)
    out3 = jax.block_until_ready(evidence_classifier_forward(x3, w_t, b))
    assert out3.shape == (515, class_num)
    assert jnp.allclose(out3, ref_fn(x3), atol=2e-5, rtol=2e-5)

    # TODO(synk): type='wn' (weight_norm) variant would be a host-side weight
    # reparameterization (g * v / ||v||) applied before calling the kernel.

    print("KERNEL_OK")
</pallas_src>

<mosaic_0001>
module attributes {stable_mosaic.version = 11 : i64} {
  func.func @evidence_classifier_kernel(%arg0: i32, %arg1: memref<8x256xf32, #tpu.memory_space<vmem>>, %arg2: memref<256x128xf32, #tpu.memory_space<vmem>>, %arg3: memref<1x128xf32, #tpu.memory_space<vmem>>, %arg4: memref<8x128xf32, #tpu.memory_space<vmem>>) attributes {dimension_semantics = [#tpu.dimension_semantics<parallel>], iteration_bounds = array<i64: 1>, scalar_prefetch = 0 : i64, scratch_operands = 0 : i64, tpu.core_type = #tpu.core_type<tc>, window_params = [{transform_indices = @transform_0, window_bounds = array<i64: 8, 256>}, {pipeline_mode = #tpu.pipeline_mode<synchronous>, transform_indices = @transform_1, window_bounds = array<i64: 256, 128>}, {pipeline_mode = #tpu.pipeline_mode<synchronous>, transform_indices = @transform_2, window_bounds = array<i64: 1, 128>}, {transform_indices = @transform_3, window_bounds = array<i64: 8, 128>}]} {
    %c0 = arith.constant 0 : index
    %c0_0 = arith.constant 0 : index
    %0 = vector.load %arg1[%c0, %c0_0] : memref<8x256xf32, #tpu.memory_space<vmem>>, vector<8x256xf32>
    %c0_1 = arith.constant 0 : index
    %c0_2 = arith.constant 0 : index
    %1 = vector.load %arg2[%c0_1, %c0_2] : memref<256x128xf32, #tpu.memory_space<vmem>>, vector<256x128xf32>
    %cst = arith.constant dense<0.000000e+00> : vector<8x128xf32>
    %2 = tpu.matmul %0, %1, %cst {dimension_numbers = #tpu.dot_dimension_numbers<[1], [0], [0], [1], [0, 0, 1, 1], [], []>} : vector<8x256xf32>, vector<256x128xf32>, vector<8x128xf32> -> vector<8x128xf32>
    %c0_3 = arith.constant 0 : index
    %c0_4 = arith.constant 0 : index
    %3 = vector.load %arg3[%c0_3, %c0_4] : memref<1x128xf32, #tpu.memory_space<vmem>>, vector<1x128xf32>
    %4 = vector.broadcast %3 : vector<1x128xf32> to vector<8x128xf32>
    %5 = arith.addf %2, %4 : vector<8x128xf32>
    %cst_5 = arith.constant 2.000000e+01 : f32
    %6 = vector.broadcast %cst_5 : f32 to vector<8x128xf32>
    %7 = arith.minimumf %5, %6 : vector<8x128xf32>
    %cst_6 = arith.constant 2.000000e+01 : f32
    %8 = vector.broadcast %cst_6 : f32 to vector<8x128xf32>
    %9 = arith.cmpf ogt, %5, %8 : vector<8x128xf32>
    %10 = math.exp %7 : vector<8x128xf32>
    %11 = math.log1p %10 : vector<8x128xf32>
    %12 = arith.select %9, %5, %11 : vector<8x128xi1>, vector<8x128xf32>
    %c0_7 = arith.constant 0 : index
    %c0_8 = arith.constant 0 : index
    %13 = vector.load %arg4[%c0_7, %c0_8] : memref<8x128xf32, #tpu.memory_space<vmem>>, vector<8x128xf32>
    tpu.vector_store %arg4[%c0_7, %c0_8], %12 {strides = array<i32>} : memref<8x128xf32, #tpu.memory_space<vmem>>, vector<8x128xf32>,
    return
  }
  func.func @transform_0(%arg0: i32) -> (i32, i32) {
    %c0_i32 = arith.constant 0 : i32
    %c0_i32_0 = arith.constant 0 : i32
    return %arg0, %c0_i32 : i32, i32
  }
  func.func @transform_1(%arg0: i32) -> (i32, i32) {
    %c0_i32 = arith.constant 0 : i32
    %c0_i32_0 = arith.constant 0 : i32
    %c0_i32_1 = arith.constant 0 : i32
    return %c0_i32, %c0_i32_0 : i32, i32
  }
  func.func @transform_2(%arg0: i32) -> (i32, i32) {
    %c0_i32 = arith.constant 0 : i32
    %c0_i32_0 = arith.constant 0 : i32
    %c0_i32_1 = arith.constant 0 : i32
    return %c0_i32, %c0_i32_0 : i32, i32
  }
  func.func @transform_3(%arg0: i32) -> (i32, i32) {
    %c0_i32 = arith.constant 0 : i32
    %c0_i32_0 = arith.constant 0 : i32
    return %arg0, %c0_i32 : i32, i32
  }
}

</mosaic_0001>

<bundles_post_ra>
// kernel: tpu_custom_call.1
= control target key start
LH: loop header
LB: loop body
LE: loop exit
PB: predicated region body
PF: predicated region fallthrough
CT: control target
= control target key end

     0   :  { %8 = vsyncpa [#allocation3], 0  ;;  %s403_s0 = inlined_call_operand.hbm [shape: f32[8,256], index: 0, kind: input, shape index: {}]   ;;  %s404_s1 = inlined_call_operand.hbm [shape: f32[256,128], index: 1, kind: input, shape index: {}]   ;;  %s405_s2 = inlined_call_operand.vmem [shape: f32[1,128], index: 2, kind: input, shape index: {}]   ;;  %s406_s3 = inlined_call_operand.hbm [shape: f32[8,128], index: 3, kind: output, shape index: {}]  }
   0x1   :  { %9 = vsyncpa [#allocation6], 0 }
   0x2   :  { %10 = vsyncpa [#allocation4], 0  ;;  %s332_s12 = smov [#allocation2]   ;;  %s333_s14 = smov [#allocation5]  }
   0x3   :  { %s17_s13 = sshll.u32 %s332_s12, 4  ;;  %s26_s15 = sshll.u32 %s333_s14, 4  ;;  %s18_s13 = int_to_ptr.vmem [resolvable:$true] %s17_s13  ;;  %s357_s15 = int_to_ptr.vmem [resolvable:$true] %s26_s15 }
   0x4   :  { %s260_s18 = scalar_lea.hbm %s403_s0, 256 }
   0x5   :  { %p261_p0 = scmp.ne.s32.totalorder %s403_s0, %s260_s18  ;;  %p264_p1 = scmp.lt.u32.totalorder %s260_s18, %s403_s0 }
   0x7   :  { %p266_p2 = pnand %p264_p1, %p261_p0 }
   0x9   :  { %269 = shalt.err (!%p266_p2)
}
   0xa   :  { %s270_s23 = scalar_lea.vmem %s18_s13, 256  ;;  %p275_p4 = scmp.lt.s32.totalorder %s18_s13, %s18_s13 }
   0xb   :  { %p271_p3 = scmp.ne.s32.totalorder %s18_s13, %s270_s23  ;;  %p276_p5 = scmp.lt.s32.totalorder %s270_s23, %s270_s23 }
   0xd   :  { %p277_p6 = por %p276_p5, %p275_p4 }
   0xf   :  { %p278_p7 = pnand %p277_p6, %p271_p3 }
  0x11   :  { %281 = shalt.err (!%p278_p7)
}
  0x12   :  { %20 = dma.hbm_to_vmem [thread:$0]  %s403_s0, 256, %s18_s13, [#allocation3]  }
  0x13   :  { %s282_s28 = scalar_lea.hbm %s404_s1, 4096 }
  0x14   :  { %p283_p8 = scmp.ne.s32.totalorder %s404_s1, %s282_s28  ;;  %p286_p9 = scmp.lt.u32.totalorder %s282_s28, %s404_s1 }
  0x16   :  { %p288_p10 = pnand %p286_p9, %p283_p8 }
  0x18   :  { %291 = shalt.err (!%p288_p10)
}
  0x19   :  { %s292_s6 = scalar_lea.vmem %s357_s15, 4096  ;;  %p297_p12 = scmp.lt.s32.totalorder %s357_s15, %s357_s15 }
  0x1a   :  { %p293_p11 = scmp.ne.s32.totalorder %s357_s15, %s292_s6  ;;  %p298_p13 = scmp.lt.s32.totalorder %s292_s6, %s292_s6 }
  0x1c   :  { %p299_p0 = por %p298_p13, %p297_p12 }
  0x1e   :  { %p300_p1 = pnand %p299_p0, %p293_p11 }
  0x20   :  { %303 = shalt.err (!%p300_p1)
}
  0x21   :  { %s334_s0 = smov 128   ;;  %s335_s7 = smov 8  }
  0x22   :  { %32 = dma.hbm_to_vmem [thread:$0]  %s404_s1, 4096, %s357_s15, [#allocation6], %s334_s0, %s334_s0, %s335_s7  }
  0x23   :  { %326 = dma.done.wait [#allocation3], 256  }
  0x24   :  { %327 = vsyncadd [#allocation3], 4294967040 }
  0x25   :  { %328 = dma.done.wait [#allocation6], 4096  }
  0x26   :  { %329 = vsyncadd [#allocation6], 4294963200  ;;  %v59_v0 = vld [vmem:[#allocation5 + $0x80] sm:$0xff]  ;;  %v60_v1 = vld [vmem:[#allocation5 + $0x88] sm:$0xff]  ;;  %s336_s11 = smov [#allocation7]  }
  0x27   :  { %v43_v2 = vld [vmem:[#allocation5] sm:$0xff]  ;;  %v219_v3 = vpack.c.bf16 %v60_v1, %v59_v0  ;;  %v44_v4 = vld [vmem:[#allocation5 + $0x8] sm:$0xff]  ;;  %v61_v5 = vld [vmem:[#allocation5 + $0x90] sm:$0xff]  ;;  %s173_s12 = sshll.u32 %s336_s11, 4  ;;  %s174_s12 = int_to_ptr.vmem [resolvable:$true] %s173_s12 }
  0x28   :  { %v62_v6 = vld [vmem:[#allocation5 + $0x98] sm:$0xff]  ;;  %v221_v7 = vpack.c.bf16 %v44_v4, %v43_v2  ;;  %v45_v9 = vld [vmem:[#allocation5 + $0x10] sm:$0xff]  ;;  %v63_v11 = vld [vmem:[#allocation5 + $0xa0] sm:$0xff]  ;;  %p309_p3 = scmp.lt.s32.totalorder %s174_s12, %s174_s12 }
  0x29   :  { %v223_v8 = vpack.c.bf16 %v62_v6, %v61_v5  ;;  %v46_v10 = vld [vmem:[#allocation5 + $0x18] sm:$0xff]  ;;  %220 = vmatprep.subr.bf16.mxu0 %v219_v3  ;;  %v64_v12 = vld [vmem:[#allocation5 + $0xa8] sm:$0xff]  ;;  %v47_v15 = vld [vmem:[#allocation5 + $0x20] sm:$0xff] }
  0x2a   :  { %222 = vmatpush3.bf16.msra.mxu0 %v221_v7  ;;  %v225_v13 = vpack.c.bf16 %v46_v10, %v45_v9  ;;  %v227_v14 = vpack.c.bf16 %v64_v12, %v63_v11  ;;  %v48_v16 = vld [vmem:[#allocation5 + $0x28] sm:$0xff]  ;;  %v65_v17 = vld [vmem:[#allocation5 + $0xb0] sm:$0xff]  ;;  %v66_v18 = vld [vmem:[#allocation5 + $0xb8] sm:$0xff] }
  0x2b   :  { %224 = vmatprep.subr.bf16.mxu0 %v223_v8  ;;  %v229_v19 = vpack.c.bf16 %v48_v16, %v47_v15  ;;  %v231_v20 = vpack.c.bf16 %v66_v18, %v65_v17  ;;  %v49_v21 = vld [vmem:[#allocation5 + $0x30] sm:$0xff]  ;;  %v50_v22 = vld [vmem:[#allocation5 + $0x38] sm:$0xff]  ;;  %v67_v23 = vld [vmem:[#allocation5 + $0xc0] sm:$0xff] }
  0x2c   :  { %v68_v24 = vld [vmem:[#allocation5 + $0xc8] sm:$0xff]  ;;  %v42_v25 = vld [vmem:[#allocation2 + $0x8] sm:$0xff]  ;;  %v233_v26 = vpack.c.bf16 %v50_v22, %v49_v21  ;;  %v51_v28 = vld [vmem:[#allocation5 + $0x40] sm:$0xff] }
  0x2d   :  { %146 = vmatprep.mubr.f32.mxu0 %v42_v25  ;;  %v235_v27 = vpack.c.bf16 %v68_v24, %v67_v23  ;;  %v52_v29 = vld [vmem:[#allocation5 + $0x48] sm:$0xff]  ;;  %v69_v30 = vld [vmem:[#allocation5 + $0xd0] sm:$0xff]  ;;  %v70_v31 = vld [vmem:[#allocation5 + $0xd8] sm:$0xff] }
  0x2e   :  { %226 = vmatpush3.bf16.msra.mxu0 %v225_v13  ;;  %v237_v32 = vpack.c.bf16 %v52_v29, %v51_v28  ;;  %v239_v33 = vpack.c.bf16 %v70_v31, %v69_v30  ;;  %v53_v34 = vld [vmem:[#allocation5 + $0x50] sm:$0xff]  ;;  %v54_v35 = vld [vmem:[#allocation5 + $0x58] sm:$0xff]  ;;  %v71_v36 = vld [vmem:[#allocation5 + $0xe0] sm:$0xff] }
  0x2f   :  { %228 = vmatprep.subr.bf16.mxu0 %v227_v14  ;;  %v72_v37 = vld [vmem:[#allocation5 + $0xe8] sm:$0xff]  ;;  %v241_v38 = vpack.c.bf16 %v54_v35, %v53_v34  ;;  %v55_v40 = vld [vmem:[#allocation5 + $0x60] sm:$0xff]  ;;  %v73_v42 = vld [vmem:[#allocation5 + $0xf0] sm:$0xff] }
  0x30   :  { %v243_v39 = vpack.c.bf16 %v72_v37, %v71_v36  ;;  %v56_v41 = vld [vmem:[#allocation5 + $0x68] sm:$0xff]  ;;  %v74_v43 = vld [vmem:[#allocation5 + $0xf8] sm:$0xff]  ;;  %v57_v46 = vld [vmem:[#allocation5 + $0x70] sm:$0xff] }
  0x31   :  { %v245_v44 = vpack.c.bf16 %v56_v41, %v55_v40  ;;  %v247_v45 = vpack.c.bf16 %v74_v43, %v73_v42  ;;  %v58_v47 = vld [vmem:[#allocation5 + $0x78] sm:$0xff]  ;;  %v41_v49 = vld [vmem:[#allocation2] sm:$0xff] }
  0x32   :  { %230 = vmatpush3.bf16.msra.mxu0 %v229_v19  ;;  %v249_v48 = vpack.c.bf16 %v58_v47, %v57_v46  ;;  %v183_v51 = vld [vmem:[%s405_s2] ss:$0 sm:$0xff]  ;;  %s304_s2 = scalar_lea.vmem %s174_s12, 128 }
  0x33   :  { %232 = vmatprep.subr.bf16.mxu0 %v231_v20  ;;  %p305_p2 = scmp.ne.s32.totalorder %s174_s12, %s304_s2  ;;  %p310_p4 = scmp.lt.s32.totalorder %s304_s2, %s304_s2 }
  0x35   :  { %p311_p5 = por %p310_p4, %p309_p3 }
  0x36   :  { %234 = vmatpush3.bf16.msra.mxu0 %v233_v26 }
  0x37   :  { %236 = vmatprep.subr.bf16.mxu0 %v235_v27  ;;  %p312_p6 = pnand %p311_p5, %p305_p2 }
  0x3a   :  { %238 = vmatpush3.bf16.msra.mxu0 %v237_v32 }
  0x3b   :  { %240 = vmatprep.subr.bf16.mxu0 %v239_v33 }
  0x3e   :  { %242 = vmatpush3.bf16.msra.mxu0 %v241_v38 }
  0x3f   :  { %244 = vmatprep.subr.bf16.mxu0 %v243_v39 }
  0x42   :  { %246 = vmatpush3.bf16.msra.mxu0 %v245_v44 }
  0x43   :  { %248 = vmatprep.subr.bf16.mxu0 %v247_v45 }
  0x46   :  { %250 = vmatpush3.bf16.msra.mxu0 %v249_v48 }
  0x49   :  { %147 = vmatmul.mubr.f32.vlgmr.msra.gmra.mrb[0].mxu0 %v41_v49 }
 0x11c   :  { %v216_v50 = vpop.f32.mrb[0].mxu0 }
 0x11d   :  { %v217_v52 = vpop.f32.mrb[1].mxu0 }
 0x11e   :  { %v218_v53 = vadd.f32 %v217_v52, %v216_v50 }
 0x120   :  { %v149_v54 = vadd.f32 %v218_v53, %v183_v51 }
 0x122   :  { %v152_v55 = vmin.f32 %v149_v54, 20.0  ;;  %vm153_vm1 = vcmp.gt.f32.partialorder %v149_v54, 20.0 }
 0x124   :  { %v154_v56 = vmul.f32 1.442695, %v152_v55 }
 0x126   :  { %256 = vpow2.f32 %v154_v56 }
 0x130   :  { %v257_v57 = vpop.eup %256 }
 0x131   :  { %v156_v58 = vadd.f32 1.0, %v257_v57  ;;  %v159_v59 = vmul.f32 -0.5, %v257_v57  ;;  %v162_v61 = vand.u32 2147483647, %v257_v57 }
 0x133   :  { %258 = vlog2.f32 %v156_v58  ;;  %v160_v60 = vadd.f32 1.0, %v159_v59  ;;  %vm163_vm0 = vcmp.lt.f32.partialorder %v162_v61, 0.0004427343 }
 0x135   :  { %v161_v0 = vmul.f32 %v257_v57, %v160_v60 }
 0x13d   :  { %v259_v62 = vpop.eup %258 }
 0x13e   :  { %v158_v63 = vmul.f32 0.6931472, %v259_v62 }
 0x140   :  { %v164_v1 = vsel %vm163_vm0, %v161_v0, %v158_v63 }
 0x141   :  { %v165_v2 = vsel %vm153_vm1, %v149_v54, %v164_v1 }
 0x142   :  { %166 = vst [vmem:[#allocation7] sm:$0xff] %v165_v2 }
 0x143   :  { %315 = shalt.err (!%p312_p6)
}
 0x144   :  { %s316_s15 = scalar_lea.hbm %s406_s3, 128 }
 0x145   :  { %p317_p7 = scmp.ne.s32.totalorder %s406_s3, %s316_s15  ;;  %p320_p8 = scmp.lt.u32.totalorder %s316_s15, %s406_s3 }
 0x147   :  { %p322_p9 = pnand %p320_p8, %p317_p7 }
 0x149   :  { %325 = shalt.err (!%p322_p9)
}
 0x14a   :  { %176 = dma.vmem_to_hbm [thread:$0]  %s174_s12, 128, %s406_s3, [#allocation4]  }
 0x14b   :  { %330 = dma.done.wait [#allocation4], 128  }
 0x14c   :  { %331 = vsyncadd [#allocation4], 4294967168 }
 0x14d   :  { %180 = vsyncpa [#allocation3], 1 }
 0x14e   :  { %181 = vsyncpa [#allocation6], 1 }
 0x14f   :  { %182 = vsyncpa [#allocation4], 1 }

</bundles_post_ra>
